<compile_context>
chip_gen: v7x
topology: tpu7x:2x2x1
jax: 0.10.0
libtpu: 0.0.40
codegen_flags: <defaults>
</compile_context>

<pallas_src>
import functools
import math

import jax
import jax.numpy as jnp
from jax.experimental import pallas as pl
from jax.experimental.pallas import tpu as pltpu

LANES = 128          # lane width of a vreg
MAX_TILE_ROWS = 512  # 512*128*4B = 256 KiB per buffer -> safe on v7x, ~roofline on v6e


def _salesnet_kernel(x_ref, w1_ref, b1_ref, w2_ref, b2_ref, o_ref, *, hidden):
    # x_ref / o_ref : [tile_rows, 128] VMEM blocks (batch along lanes+sublanes)
    # w1_ref, b1_ref, w2_ref : [H] SMEM;  b2_ref : [1] SMEM
    x = x_ref[...]                                   # [tile_rows, 128] f32
    acc = jnp.zeros_like(x)
    # Fully-unrolled accumulation over hidden units -- pure VPU work, no XLU.
    for j in range(hidden):
        h = jnp.maximum(x * w1_ref[j] + b1_ref[j], 0.0)
        acc = acc + h * w2_ref[j]
    o_ref[...] = acc + b2_ref[0]


def salesnet_forward(x, w1, b1, w2, b2):
    """Forward pass of SalesNet.

    x : [N, 1] float32
    w1: [H, 1] (hidden.weight), b1: [H] (hidden.bias)
    w2: [1, H] (output.weight), b2: [1] (output.bias)
    returns [N, 1] float32
    """
    N = x.shape[0]
    H = w1.shape[0]

    # ---- lane-dense batch layout: [N,1] -> [rows_padded, 128] ----
    rows = max(1, math.ceil(N / LANES))
    tile_rows = min(MAX_TILE_ROWS, ((rows + 7) // 8) * 8)  # multiple of 8 sublanes
    rows_padded = math.ceil(rows / tile_rows) * tile_rows
    n_padded = rows_padded * LANES

    x_flat = x.reshape(-1).astype(jnp.float32)
    x_pad = jnp.pad(x_flat, (0, n_padded - N))
    x2d = x_pad.reshape(rows_padded, LANES)

    # ---- scalar params as flat 1-D SMEM arrays ----
    w1_s = w1.reshape(H).astype(jnp.float32)
    b1_s = b1.reshape(H).astype(jnp.float32)
    w2_s = w2.reshape(H).astype(jnp.float32)
    b2_s = b2.reshape(1).astype(jnp.float32)

    num_tiles = rows_padded // tile_rows
    smem_spec = pl.BlockSpec(memory_space=pltpu.MemorySpace.SMEM)
    batch_spec = pl.BlockSpec((tile_rows, LANES), lambda i: (i, 0))

    out2d = pl.pallas_call(
        functools.partial(_salesnet_kernel, hidden=H),
        out_shape=jax.ShapeDtypeStruct((rows_padded, LANES), jnp.float32),
        grid=(num_tiles,),
        in_specs=[batch_spec, smem_spec, smem_spec, smem_spec, smem_spec],
        out_specs=batch_spec,
        compiler_params=pltpu.CompilerParams(
            dimension_semantics=("parallel",),
        ),
    )(x2d, w1_s, b1_s, w2_s, b2_s)

    # strip padding, back to [N, 1]
    return out2d.reshape(-1)[:N].reshape(N, 1)


if __name__ == "__main__":
    N = 8    # batch of scalar sales inputs
    H = 32   # hidden_neurons

    key = jax.random.PRNGKey(0)
    kx, k1, k2, k3, k4 = jax.random.split(key, 5)

    x = jax.random.normal(kx, (N, 1), dtype=jnp.float32)
    # PyTorch Linear parameter shapes.
    w1 = jax.random.normal(k1, (H, 1), dtype=jnp.float32) * 0.5   # hidden.weight
    b1 = jax.random.normal(k2, (H,), dtype=jnp.float32) * 0.1     # hidden.bias
    w2 = jax.random.normal(k3, (1, H), dtype=jnp.float32) * 0.5   # output.weight
    b2 = jax.random.normal(k4, (1,), dtype=jnp.float32) * 0.1     # output.bias

    out = salesnet_forward(x, w1, b1, w2, b2)
    jax.block_until_ready(out)

    # Pure-JAX reference check.
    ref = jnp.maximum(x @ w1.T + b1, 0.0) @ w2.T + b2
    assert out.shape == (N, 1)
    assert jnp.allclose(out, ref, atol=1e-4, rtol=1e-4), "mismatch vs reference"
    print("KERNEL_OK")
</pallas_src>

<mosaic_0001>
module attributes {stable_mosaic.version = 11 : i64} {
  func.func @_salesnet_kernel(%arg0: i32, %arg1: memref<8x128xf32, #tpu.memory_space<vmem>>, %arg2: memref<32xf32, #tpu.memory_space<smem>>, %arg3: memref<32xf32, #tpu.memory_space<smem>>, %arg4: memref<32xf32, #tpu.memory_space<smem>>, %arg5: memref<1xf32, #tpu.memory_space<smem>>, %arg6: memref<8x128xf32, #tpu.memory_space<vmem>>) attributes {dimension_semantics = [#tpu.dimension_semantics<parallel>], iteration_bounds = array<i64: 1>, scalar_prefetch = 0 : i64, scratch_operands = 0 : i64, tpu.core_type = #tpu.core_type<tc>, window_params = [{transform_indices = @transform_0, window_bounds = array<i64: 8, 128>}, {transform_indices = @transform_1, window_bounds = array<i64: 32>}, {transform_indices = @transform_2, window_bounds = array<i64: 32>}, {transform_indices = @transform_3, window_bounds = array<i64: 32>}, {transform_indices = @transform_4, window_bounds = array<i64: 1>}, {transform_indices = @transform_5, window_bounds = array<i64: 8, 128>}]} {
    %c0 = arith.constant 0 : index
    %c0_0 = arith.constant 0 : index
    %0 = vector.load %arg1[%c0, %c0_0] : memref<8x128xf32, #tpu.memory_space<vmem>>, vector<8x128xf32>
    %cst = arith.constant 0.000000e+00 : f32
    %1 = vector.broadcast %cst : f32 to vector<8x128xf32>
    %c0_1 = arith.constant 0 : index
    %2 = memref.load %arg2[%c0_1] : memref<32xf32, #tpu.memory_space<smem>>
    %3 = vector.broadcast %2 : f32 to vector<8x128xf32>
    %4 = arith.mulf %0, %3 : vector<8x128xf32>
    %c0_2 = arith.constant 0 : index
    %5 = memref.load %arg3[%c0_2] : memref<32xf32, #tpu.memory_space<smem>>
    %6 = vector.broadcast %5 : f32 to vector<8x128xf32>
    %7 = arith.addf %4, %6 : vector<8x128xf32>
    %cst_3 = arith.constant 0.000000e+00 : f32
    %8 = vector.broadcast %cst_3 : f32 to vector<8x128xf32>
    %9 = arith.maximumf %7, %8 : vector<8x128xf32>
    %c0_4 = arith.constant 0 : index
    %10 = memref.load %arg4[%c0_4] : memref<32xf32, #tpu.memory_space<smem>>
    %11 = vector.broadcast %10 : f32 to vector<8x128xf32>
    %12 = arith.mulf %9, %11 : vector<8x128xf32>
    %13 = arith.addf %1, %12 : vector<8x128xf32>
    %c1 = arith.constant 1 : index
    %14 = memref.load %arg2[%c1] : memref<32xf32, #tpu.memory_space<smem>>
    %15 = vector.broadcast %14 : f32 to vector<8x128xf32>
    %16 = arith.mulf %0, %15 : vector<8x128xf32>
    %c1_5 = arith.constant 1 : index
    %17 = memref.load %arg3[%c1_5] : memref<32xf32, #tpu.memory_space<smem>>
    %18 = vector.broadcast %17 : f32 to vector<8x128xf32>
    %19 = arith.addf %16, %18 : vector<8x128xf32>
    %cst_6 = arith.constant 0.000000e+00 : f32
    %20 = vector.broadcast %cst_6 : f32 to vector<8x128xf32>
    %21 = arith.maximumf %19, %20 : vector<8x128xf32>
    %c1_7 = arith.constant 1 : index
    %22 = memref.load %arg4[%c1_7] : memref<32xf32, #tpu.memory_space<smem>>
    %23 = vector.broadcast %22 : f32 to vector<8x128xf32>
    %24 = arith.mulf %21, %23 : vector<8x128xf32>
    %25 = arith.addf %13, %24 : vector<8x128xf32>
    %c2 = arith.constant 2 : index
    %26 = memref.load %arg2[%c2] : memref<32xf32, #tpu.memory_space<smem>>
    %27 = vector.broadcast %26 : f32 to vector<8x128xf32>
    %28 = arith.mulf %0, %27 : vector<8x128xf32>
    %c2_8 = arith.constant 2 : index
    %29 = memref.load %arg3[%c2_8] : memref<32xf32, #tpu.memory_space<smem>>
    %30 = vector.broadcast %29 : f32 to vector<8x128xf32>
    %31 = arith.addf %28, %30 : vector<8x128xf32>
    %cst_9 = arith.constant 0.000000e+00 : f32
    %32 = vector.broadcast %cst_9 : f32 to vector<8x128xf32>
    %33 = arith.maximumf %31, %32 : vector<8x128xf32>
    %c2_10 = arith.constant 2 : index
    %34 = memref.load %arg4[%c2_10] : memref<32xf32, #tpu.memory_space<smem>>
    %35 = vector.broadcast %34 : f32 to vector<8x128xf32>
    %36 = arith.mulf %33, %35 : vector<8x128xf32>
    %37 = arith.addf %25, %36 : vector<8x128xf32>
    %c3 = arith.constant 3 : index
    %38 = memref.load %arg2[%c3] : memref<32xf32, #tpu.memory_space<smem>>
    %39 = vector.broadcast %38 : f32 to vector<8x128xf32>
    %40 = arith.mulf %0, %39 : vector<8x128xf32>
    %c3_11 = arith.constant 3 : index
    %41 = memref.load %arg3[%c3_11] : memref<32xf32, #tpu.memory_space<smem>>
    %42 = vector.broadcast %41 : f32 to vector<8x128xf32>
    %43 = arith.addf %40, %42 : vector<8x128xf32>
    %cst_12 = arith.constant 0.000000e+00 : f32
    %44 = vector.broadcast %cst_12 : f32 to vector<8x128xf32>
    %45 = arith.maximumf %43, %44 : vector<8x128xf32>
    %c3_13 = arith.constant 3 : index
    %46 = memref.load %arg4[%c3_13] : memref<32xf32, #tpu.memory_space<smem>>
    %47 = vector.broadcast %46 : f32 to vector<8x128xf32>
    %48 = arith.mulf %45, %47 : vector<8x128xf32>
    %49 = arith.addf %37, %48 : vector<8x128xf32>
    %c4 = arith.constant 4 : index
    %50 = memref.load %arg2[%c4] : memref<32xf32, #tpu.memory_space<smem>>
    %51 = vector.broadcast %50 : f32 to vector<8x128xf32>
    %52 = arith.mulf %0, %51 : vector<8x128xf32>
    %c4_14 = arith.constant 4 : index
    %53 = memref.load %arg3[%c4_14] : memref<32xf32, #tpu.memory_space<smem>>
    %54 = vector.broadcast %53 : f32 to vector<8x128xf32>
    %55 = arith.addf %52, %54 : vector<8x128xf32>
    %cst_15 = arith.constant 0.000000e+00 : f32
    %56 = vector.broadcast %cst_15 : f32 to vector<8x128xf32>
    %57 = arith.maximumf %55, %56 : vector<8x128xf32>
    %c4_16 = arith.constant 4 : index
    %58 = memref.load %arg4[%c4_16] : memref<32xf32, #tpu.memory_space<smem>>
    %59 = vector.broadcast %58 : f32 to vector<8x128xf32>
    %60 = arith.mulf %57, %59 : vector<8x128xf32>
    %61 = arith.addf %49, %60 : vector<8x128xf32>
    %c5 = arith.constant 5 : index
    %62 = memref.load %arg2[%c5] : memref<32xf32, #tpu.memory_space<smem>>
    %63 = vector.broadcast %62 : f32 to vector<8x128xf32>
    %64 = arith.mulf %0, %63 : vector<8x128xf32>
    %c5_17 = arith.constant 5 : index
    %65 = memref.load %arg3[%c5_17] : memref<32xf32, #tpu.memory_space<smem>>
    %66 = vector.broadcast %65 : f32 to vector<8x128xf32>
    %67 = arith.addf %64, %66 : vector<8x128xf32>
    %cst_18 = arith.constant 0.000000e+00 : f32
    %68 = vector.broadcast %cst_18 : f32 to vector<8x128xf32>
    %69 = arith.maximumf %67, %68 : vector<8x128xf32>
    %c5_19 = arith.constant 5 : index
    %70 = memref.load %arg4[%c5_19] : memref<32xf32, #tpu.memory_space<smem>>
    %71 = vector.broadcast %70 : f32 to vector<8x128xf32>
    %72 = arith.mulf %69, %71 : vector<8x128xf32>
    %73 = arith.addf %61, %72 : vector<8x128xf32>
    %c6 = arith.constant 6 : index
    %74 = memref.load %arg2[%c6] : memref<32xf32, #tpu.memory_space<smem>>
    %75 = vector.broadcast %74 : f32 to vector<8x128xf32>
    %76 = arith.mulf %0, %75 : vector<8x128xf32>
    %c6_20 = arith.constant 6 : index
    %77 = memref.load %arg3[%c6_20] : memref<32xf32, #tpu.memory_space<smem>>
    %78 = vector.broadcast %77 : f32 to vector<8x128xf32>
    %79 = arith.addf %76, %78 : vector<8x128xf32>
    %cst_21 = arith.constant 0.000000e+00 : f32
    %80 = vector.broadcast %cst_21 : f32 to vector<8x128xf32>
    %81 = arith.maximumf %79, %80 : vector<8x128xf32>
    %c6_22 = arith.constant 6 : index
    %82 = memref.load %arg4[%c6_22] : memref<32xf32, #tpu.memory_space<smem>>
    %83 = vector.broadcast %82 : f32 to vector<8x128xf32>
    %84 = arith.mulf %81, %83 : vector<8x128xf32>
    %85 = arith.addf %73, %84 : vector<8x128xf32>
    %c7 = arith.constant 7 : index
    %86 = memref.load %arg2[%c7] : memref<32xf32, #tpu.memory_space<smem>>
    %87 = vector.broadcast %86 : f32 to vector<8x128xf32>
    %88 = arith.mulf %0, %87 : vector<8x128xf32>
    %c7_23 = arith.constant 7 : index
    %89 = memref.load %arg3[%c7_23] : memref<32xf32, #tpu.memory_space<smem>>
    %90 = vector.broadcast %89 : f32 to vector<8x128xf32>
    %91 = arith.addf %88, %90 : vector<8x128xf32>
    %cst_24 = arith.constant 0.000000e+00 : f32
    %92 = vector.broadcast %cst_24 : f32 to vector<8x128xf32>
    %93 = arith.maximumf %91, %92 : vector<8x128xf32>
    %c7_25 = arith.constant 7 : index
    %94 = memref.load %arg4[%c7_25] : memref<32xf32, #tpu.memory_space<smem>>
    %95 = vector.broadcast %94 : f32 to vector<8x128xf32>
    %96 = arith.mulf %93, %95 : vector<8x128xf32>
    %97 = arith.addf %85, %96 : vector<8x128xf32>
    %c8 = arith.constant 8 : index
    %98 = memref.load %arg2[%c8] : memref<32xf32, #tpu.memory_space<smem>>
    %99 = vector.broadcast %98 : f32 to vector<8x128xf32>
    %100 = arith.mulf %0, %99 : vector<8x128xf32>
    %c8_26 = arith.constant 8 : index
    %101 = memref.load %arg3[%c8_26] : memref<32xf32, #tpu.memory_space<smem>>
    %102 = vector.broadcast %101 : f32 to vector<8x128xf32>
    %103 = arith.addf %100, %102 : vector<8x128xf32>
    %cst_27 = arith.constant 0.000000e+00 : f32
    %104 = vector.broadcast %cst_27 : f32 to vector<8x128xf32>
    %105 = arith.maximumf %103, %104 : vector<8x128xf32>
    %c8_28 = arith.constant 8 : index
    %106 = memref.load %arg4[%c8_28] : memref<32xf32, #tpu.memory_space<smem>>
    %107 = vector.broadcast %106 : f32 to vector<8x128xf32>
    %108 = arith.mulf %105, %107 : vector<8x128xf32>
    %109 = arith.addf %97, %108 : vector<8x128xf32>
    %c9 = arith.constant 9 : index
    %110 = memref.load %arg2[%c9] : memref<32xf32, #tpu.memory_space<smem>>
    %111 = vector.broadcast %110 : f32 to vector<8x128xf32>
    %112 = arith.mulf %0, %111 : vector<8x128xf32>
    %c9_29 = arith.constant 9 : index
    %113 = memref.load %arg3[%c9_29] : memref<32xf32, #tpu.memory_space<smem>>
    %114 = vector.broadcast %113 : f32 to vector<8x128xf32>
    %115 = arith.addf %112, %114 : vector<8x128xf32>
    %cst_30 = arith.constant 0.000000e+00 : f32
    %116 = vector.broadcast %cst_30 : f32 to vector<8x128xf32>
    %117 = arith.maximumf %115, %116 : vector<8x128xf32>
    %c9_31 = arith.constant 9 : index
    %118 = memref.load %arg4[%c9_31] : memref<32xf32, #tpu.memory_space<smem>>
    %119 = vector.broadcast %118 : f32 to vector<8x128xf32>
    %120 = arith.mulf %117, %119 : vector<8x128xf32>
    %121 = arith.addf %109, %120 : vector<8x128xf32>
    %c10 = arith.constant 10 : index
    %122 = memref.load %arg2[%c10] : memref<32xf32, #tpu.memory_space<smem>>
    %123 = vector.broadcast %122 : f32 to vector<8x128xf32>
    %124 = arith.mulf %0, %123 : vector<8x128xf32>
    %c10_32 = arith.constant 10 : index
    %125 = memref.load %arg3[%c10_32] : memref<32xf32, #tpu.memory_space<smem>>
    %126 = vector.broadcast %125 : f32 to vector<8x128xf32>
    %127 = arith.addf %124, %126 : vector<8x128xf32>
    %cst_33 = arith.constant 0.000000e+00 : f32
    %128 = vector.broadcast %cst_33 : f32 to vector<8x128xf32>
    %129 = arith.maximumf %127, %128 : vector<8x128xf32>
    %c10_34 = arith.constant 10 : index
    %130 = memref.load %arg4[%c10_34] : memref<32xf32, #tpu.memory_space<smem>>
    %131 = vector.broadcast %130 : f32 to vector<8x128xf32>
    %132 = arith.mulf %129, %131 : vector<8x128xf32>
    %133 = arith.addf %121, %132 : vector<8x128xf32>
    %c11 = arith.constant 11 : index
    %134 = memref.load %arg2[%c11] : memref<32xf32, #tpu.memory_space<smem>>
    %135 = vector.broadcast %134 : f32 to vector<8x128xf32>
    %136 = arith.mulf %0, %135 : vector<8x128xf32>
    %c11_35 = arith.constant 11 : index
    %137 = memref.load %arg3[%c11_35] : memref<32xf32, #tpu.memory_space<smem>>
    %138 = vector.broadcast %137 : f32 to vector<8x128xf32>
    %139 = arith.addf %136, %138 : vector<8x128xf32>
    %cst_36 = arith.constant 0.000000e+00 : f32
    %140 = vector.broadcast %cst_36 : f32 to vector<8x128xf32>
    %141 = arith.maximumf %139, %140 : vector<8x128xf32>
    %c11_37 = arith.constant 11 : index
    %142 = memref.load %arg4[%c11_37] : memref<32xf32, #tpu.memory_space<smem>>
    %143 = vector.broadcast %142 : f32 to vector<8x128xf32>
    %144 = arith.mulf %141, %143 : vector<8x128xf32>
    %145 = arith.addf %133, %144 : vector<8x128xf32>
    %c12 = arith.constant 12 : index
    %146 = memref.load %arg2[%c12] : memref<32xf32, #tpu.memory_space<smem>>
    %147 = vector.broadcast %146 : f32 to vector<8x128xf32>
    %148 = arith.mulf %0, %147 : vector<8x128xf32>
    %c12_38 = arith.constant 12 : index
    %149 = memref.load %arg3[%c12_38] : memref<32xf32, #tpu.memory_space<smem>>
    %150 = vector.broadcast %149 : f32 to vector<8x128xf32>
    %151 = arith.addf %148, %150 : vector<8x128xf32>
    %cst_39 = arith.constant 0.000000e+00 : f32
    %152 = vector.broadcast %cst_39 : f32 to vector<8x128xf32>
    %153 = arith.maximumf %151, %152 : vector<8x128xf32>
    %c12_40 = arith.constant 12 : index
    %154 = memref.load %arg4[%c12_40] : memref<32xf32, #tpu.memory_space<smem>>
    %155 = vector.broadcast %154 : f32 to vector<8x128xf32>
    %156 = arith.mulf %153, %155 : vector<8x128xf32>
    %157 = arith.addf %145, %156 : vector<8x128xf32>
    %c13 = arith.constant 13 : index
    %158 = memref.load %arg2[%c13] : memref<32xf32, #tpu.memory_space<smem>>
    %159 = vector.broadcast %158 : f32 to vector<8x128xf32>
    %160 = arith.mulf %0, %159 : vector<8x128xf32>
    %c13_41 = arith.constant 13 : index
    %161 = memref.load %arg3[%c13_41] : memref<32xf32, #tpu.memory_space<smem>>
    %162 = vector.broadcast %161 : f32 to vector<8x128xf32>
    %163 = arith.addf %160, %162 : vector<8x128xf32>
    %cst_42 = arith.constant 0.000000e+00 : f32
    %164 = vector.broadcast %cst_42 : f32 to vector<8x128xf32>
    %165 = arith.maximumf %163, %164 : vector<8x128xf32>
    %c13_43 = arith.constant 13 : index
    %166 = memref.load %arg4[%c13_43] : memref<32xf32, #tpu.memory_space<smem>>
    %167 = vector.broadcast %166 : f32 to vector<8x128xf32>
    %168 = arith.mulf %165, %167 : vector<8x128xf32>
    %169 = arith.addf %157, %168 : vector<8x128xf32>
    %c14 = arith.constant 14 : index
    %170 = memref.load %arg2[%c14] : memref<32xf32, #tpu.memory_space<smem>>
    %171 = vector.broadcast %170 : f32 to vector<8x128xf32>
    %172 = arith.mulf %0, %171 : vector<8x128xf32>
    %c14_44 = arith.constant 14 : index
    %173 = memref.load %arg3[%c14_44] : memref<32xf32, #tpu.memory_space<smem>>
    %174 = vector.broadcast %173 : f32 to vector<8x128xf32>
    %175 = arith.addf %172, %174 : vector<8x128xf32>
    %cst_45 = arith.constant 0.000000e+00 : f32
    %176 = vector.broadcast %cst_45 : f32 to vector<8x128xf32>
    %177 = arith.maximumf %175, %176 : vector<8x128xf32>
    %c14_46 = arith.constant 14 : index
    %178 = memref.load %arg4[%c14_46] : memref<32xf32, #tpu.memory_space<smem>>
    %179 = vector.broadcast %178 : f32 to vector<8x128xf32>
    %180 = arith.mulf %177, %179 : vector<8x128xf32>
    %181 = arith.addf %169, %180 : vector<8x128xf32>
    %c15 = arith.constant 15 : index
    %182 = memref.load %arg2[%c15] : memref<32xf32, #tpu.memory_space<smem>>
    %183 = vector.broadcast %182 : f32 to vector<8x128xf32>
    %184 = arith.mulf %0, %183 : vector<8x128xf32>
    %c15_47 = arith.constant 15 : index
    %185 = memref.load %arg3[%c15_47] : memref<32xf32, #tpu.memory_space<smem>>
    %186 = vector.broadcast %185 : f32 to vector<8x128xf32>
    %187 = arith.addf %184, %186 : vector<8x128xf32>
    %cst_48 = arith.constant 0.000000e+00 : f32
    %188 = vector.broadcast %cst_48 : f32 to vector<8x128xf32>
    %189 = arith.maximumf %187, %188 : vector<8x128xf32>
    %c15_49 = arith.constant 15 : index
    %190 = memref.load %arg4[%c15_49] : memref<32xf32, #tpu.memory_space<smem>>
    %191 = vector.broadcast %190 : f32 to vector<8x128xf32>
    %192 = arith.mulf %189, %191 : vector<8x128xf32>
    %193 = arith.addf %181, %192 : vector<8x128xf32>
    %c16 = arith.constant 16 : index
    %194 = memref.load %arg2[%c16] : memref<32xf32, #tpu.memory_space<smem>>
    %195 = vector.broadcast %194 : f32 to vector<8x128xf32>
    %196 = arith.mulf %0, %195 : vector<8x128xf32>
    %c16_50 = arith.constant 16 : index
    %197 = memref.load %arg3[%c16_50] : memref<32xf32, #tpu.memory_space<smem>>
    %198 = vector.broadcast %197 : f32 to vector<8x128xf32>
    %199 = arith.addf %196, %198 : vector<8x128xf32>
    %cst_51 = arith.constant 0.000000e+00 : f32
    %200 = vector.broadcast %cst_51 : f32 to vector<8x128xf32>
    %201 = arith.maximumf %199, %200 : vector<8x128xf32>
    %c16_52 = arith.constant 16 : index
    %202 = memref.load %arg4[%c16_52] : memref<32xf32, #tpu.memory_space<smem>>
    %203 = vector.broadcast %202 : f32 to vector<8x128xf32>
    %204 = arith.mulf %201, %203 : vector<8x128xf32>
    %205 = arith.addf %193, %204 : vector<8x128xf32>
    %c17 = arith.constant 17 : index
    %206 = memref.load %arg2[%c17] : memref<32xf32, #tpu.memory_space<smem>>
    %207 = vector.broadcast %206 : f32 to vector<8x128xf32>
    %208 = arith.mulf %0, %207 : vector<8x128xf32>
    %c17_53 = arith.constant 17 : index
    %209 = memref.load %arg3[%c17_53] : memref<32xf32, #tpu.memory_space<smem>>
    %210 = vector.broadcast %209 : f32 to vector<8x128xf32>
    %211 = arith.addf %208, %210 : vector<8x128xf32>
    %cst_54 = arith.constant 0.000000e+00 : f32
    %212 = vector.broadcast %cst_54 : f32 to vector<8x128xf32>
    %213 = arith.maximumf %211, %212 : vector<8x128xf32>
    %c17_55 = arith.constant 17 : index
    %214 = memref.load %arg4[%c17_55] : memref<32xf32, #tpu.memory_space<smem>>
    %215 = vector.broadcast %214 : f32 to vector<8x128xf32>
    %216 = arith.mulf %213, %215 : vector<8x128xf32>
    %217 = arith.addf %205, %216 : vector<8x128xf32>
    %c18 = arith.constant 18 : index
    %218 = memref.load %arg2[%c18] : memref<32xf32, #tpu.memory_space<smem>>
    %219 = vector.broadcast %218 : f32 to vector<8x128xf32>
    %220 = arith.mulf %0, %219 : vector<8x128xf32>
    %c18_56 = arith.constant 18 : index
    %221 = memref.load %arg3[%c18_56] : memref<32xf32, #tpu.memory_space<smem>>
    %222 = vector.broadcast %221 : f32 to vector<8x128xf32>
    %223 = arith.addf %220, %222 : vector<8x128xf32>
    %cst_57 = arith.constant 0.000000e+00 : f32
    %224 = vector.broadcast %cst_57 : f32 to vector<8x128xf32>
    %225 = arith.maximumf %223, %224 : vector<8x128xf32>
    %c18_58 = arith.constant 18 : index
    %226 = memref.load %arg4[%c18_58] : memref<32xf32, #tpu.memory_space<smem>>
    %227 = vector.broadcast %226 : f32 to vector<8x128xf32>
    %228 = arith.mulf %225, %227 : vector<8x128xf32>
    %229 = arith.addf %217, %228 : vector<8x128xf32>
    %c19 = arith.constant 19 : index
    %230 = memref.load %arg2[%c19] : memref<32xf32, #tpu.memory_space<smem>>
    %231 = vector.broadcast %230 : f32 to vector<8x128xf32>
    %232 = arith.mulf %0, %231 : vector<8x128xf32>
    %c19_59 = arith.constant 19 : index
    %233 = memref.load %arg3[%c19_59] : memref<32xf32, #tpu.memory_space<smem>>
    %234 = vector.broadcast %233 : f32 to vector<8x128xf32>
    %235 = arith.addf %232, %234 : vector<8x128xf32>
    %cst_60 = arith.constant 0.000000e+00 : f32
    %236 = vector.broadcast %cst_60 : f32 to vector<8x128xf32>
    %237 = arith.maximumf %235, %236 : vector<8x128xf32>
    %c19_61 = arith.constant 19 : index
    %238 = memref.load %arg4[%c19_61] : memref<32xf32, #tpu.memory_space<smem>>
    %239 = vector.broadcast %238 : f32 to vector<8x128xf32>
    %240 = arith.mulf %237, %239 : vector<8x128xf32>
    %241 = arith.addf %229, %240 : vector<8x128xf32>
    %c20 = arith.constant 20 : index
    %242 = memref.load %arg2[%c20] : memref<32xf32, #tpu.memory_space<smem>>
    %243 = vector.broadcast %242 : f32 to vector<8x128xf32>
    %244 = arith.mulf %0, %243 : vector<8x128xf32>
    %c20_62 = arith.constant 20 : index
    %245 = memref.load %arg3[%c20_62] : memref<32xf32, #tpu.memory_space<smem>>
    %246 = vector.broadcast %245 : f32 to vector<8x128xf32>
    %247 = arith.addf %244, %246 : vector<8x128xf32>
    %cst_63 = arith.constant 0.000000e+00 : f32
    %248 = vector.broadcast %cst_63 : f32 to vector<8x128xf32>
    %249 = arith.maximumf %247, %248 : vector<8x128xf32>
    %c20_64 = arith.constant 20 : index
    %250 = memref.load %arg4[%c20_64] : memref<32xf32, #tpu.memory_space<smem>>
    %251 = vector.broadcast %250 : f32 to vector<8x128xf32>
    %252 = arith.mulf %249, %251 : vector<8x128xf32>
    %253 = arith.addf %241, %252 : vector<8x128xf32>
    %c21 = arith.constant 21 : index
    %254 = memref.load %arg2[%c21] : memref<32xf32, #tpu.memory_space<smem>>
    %255 = vector.broadcast %254 : f32 to vector<8x128xf32>
    %256 = arith.mulf %0, %255 : vector<8x128xf32>
    %c21_65 = arith.constant 21 : index
    %257 = memref.load %arg3[%c21_65] : memref<32xf32, #tpu.memory_space<smem>>
    %258 = vector.broadcast %257 : f32 to vector<8x128xf32>
    %259 = arith.addf %256, %258 : vector<8x128xf32>
    %cst_66 = arith.constant 0.000000e+00 : f32
    %260 = vector.broadcast %cst_66 : f32 to vector<8x128xf32>
    %261 = arith.maximumf %259, %260 : vector<8x128xf32>
    %c21_67 = arith.constant 21 : index
    %262 = memref.load %arg4[%c21_67] : memref<32xf32, #tpu.memory_space<smem>>
    %263 = vector.broadcast %262 : f32 to vector<8x128xf32>
    %264 = arith.mulf %261, %263 : vector<8x128xf32>
    %265 = arith.addf %253, %264 : vector<8x128xf32>
    %c22 = arith.constant 22 : index
    %266 = memref.load %arg2[%c22] : memref<32xf32, #tpu.memory_space<smem>>
    %267 = vector.broadcast %266 : f32 to vector<8x128xf32>
    %268 = arith.mulf %0, %267 : vector<8x128xf32>
    %c22_68 = arith.constant 22 : index
    %269 = memref.load %arg3[%c22_68] : memref<32xf32, #tpu.memory_space<smem>>
    %270 = vector.broadcast %269 : f32 to vector<8x128xf32>
    %271 = arith.addf %268, %270 : vector<8x128xf32>
    %cst_69 = arith.constant 0.000000e+00 : f32
    %272 = vector.broadcast %cst_69 : f32 to vector<8x128xf32>
    %273 = arith.maximumf %271, %272 : vector<8x128xf32>
    %c22_70 = arith.constant 22 : index
    %274 = memref.load %arg4[%c22_70] : memref<32xf32, #tpu.memory_space<smem>>
    %275 = vector.broadcast %274 : f32 to vector<8x128xf32>
    %276 = arith.mulf %273, %275 : vector<8x128xf32>
    %277 = arith.addf %265, %276 : vector<8x128xf32>
    %c23 = arith.constant 23 : index
    %278 = memref.load %arg2[%c23] : memref<32xf32, #tpu.memory_space<smem>>
    %279 = vector.broadcast %278 : f32 to vector<8x128xf32>
    %280 = arith.mulf %0, %279 : vector<8x128xf32>
    %c23_71 = arith.constant 23 : index
    %281 = memref.load %arg3[%c23_71] : memref<32xf32, #tpu.memory_space<smem>>
    %282 = vector.broadcast %281 : f32 to vector<8x128xf32>
    %283 = arith.addf %280, %282 : vector<8x128xf32>
    %cst_72 = arith.constant 0.000000e+00 : f32
    %284 = vector.broadcast %cst_72 : f32 to vector<8x128xf32>
    %285 = arith.maximumf %283, %284 : vector<8x128xf32>
    %c23_73 = arith.constant 23 : index
    %286 = memref.load %arg4[%c23_73] : memref<32xf32, #tpu.memory_space<smem>>
    %287 = vector.broadcast %286 : f32 to vector<8x128xf32>
    %288 = arith.mulf %285, %287 : vector<8x128xf32>
    %289 = arith.addf %277, %288 : vector<8x128xf32>
    %c24 = arith.constant 24 : index
    %290 = memref.load %arg2[%c24] : memref<32xf32, #tpu.memory_space<smem>>
    %291 = vector.broadcast %290 : f32 to vector<8x128xf32>
    %292 = arith.mulf %0, %291 : vector<8x128xf32>
    %c24_74 = arith.constant 24 : index
    %293 = memref.load %arg3[%c24_74] : memref<32xf32, #tpu.memory_space<smem>>
    %294 = vector.broadcast %293 : f32 to vector<8x128xf32>
    %295 = arith.addf %292, %294 : vector<8x128xf32>
    %cst_75 = arith.constant 0.000000e+00 : f32
    %296 = vector.broadcast %cst_75 : f32 to vector<8x128xf32>
    %297 = arith.maximumf %295, %296 : vector<8x128xf32>
    %c24_76 = arith.constant 24 : index
    %298 = memref.load %arg4[%c24_76] : memref<32xf32, #tpu.memory_space<smem>>
    %299 = vector.broadcast %298 : f32 to vector<8x128xf32>
    %300 = arith.mulf %297, %299 : vector<8x128xf32>
    %301 = arith.addf %289, %300 : vector<8x128xf32>
    %c25 = arith.constant 25 : index
    %302 = memref.load %arg2[%c25] : memref<32xf32, #tpu.memory_space<smem>>
    %303 = vector.broadcast %302 : f32 to vector<8x128xf32>
    %304 = arith.mulf %0, %303 : vector<8x128xf32>
    %c25_77 = arith.constant 25 : index
    %305 = memref.load %arg3[%c25_77] : memref<32xf32, #tpu.memory_space<smem>>
    %306 = vector.broadcast %305 : f32 to vector<8x128xf32>
    %307 = arith.addf %304, %306 : vector<8x128xf32>
    %cst_78 = arith.constant 0.000000e+00 : f32
    %308 = vector.broadcast %cst_78 : f32 to vector<8x128xf32>
    %309 = arith.maximumf %307, %308 : vector<8x128xf32>
    %c25_79 = arith.constant 25 : index
    %310 = memref.load %arg4[%c25_79] : memref<32xf32, #tpu.memory_space<smem>>
    %311 = vector.broadcast %310 : f32 to vector<8x128xf32>
    %312 = arith.mulf %309, %311 : vector<8x128xf32>
    %313 = arith.addf %301, %312 : vector<8x128xf32>
    %c26 = arith.constant 26 : index
    %314 = memref.load %arg2[%c26] : memref<32xf32, #tpu.memory_space<smem>>
    %315 = vector.broadcast %314 : f32 to vector<8x128xf32>
    %316 = arith.mulf %0, %315 : vector<8x128xf32>
    %c26_80 = arith.constant 26 : index
    %317 = memref.load %arg3[%c26_80] : memref<32xf32, #tpu.memory_space<smem>>
    %318 = vector.broadcast %317 : f32 to vector<8x128xf32>
    %319 = arith.addf %316, %318 : vector<8x128xf32>
    %cst_81 = arith.constant 0.000000e+00 : f32
    %320 = vector.broadcast %cst_81 : f32 to vector<8x128xf32>
    %321 = arith.maximumf %319, %320 : vector<8x128xf32>
    %c26_82 = arith.constant 26 : index
    %322 = memref.load %arg4[%c26_82] : memref<32xf32, #tpu.memory_space<smem>>
    %323 = vector.broadcast %322 : f32 to vector<8x128xf32>
    %324 = arith.mulf %321, %323 : vector<8x128xf32>
    %325 = arith.addf %313, %324 : vector<8x128xf32>
    %c27 = arith.constant 27 : index
    %326 = memref.load %arg2[%c27] : memref<32xf32, #tpu.memory_space<smem>>
    %327 = vector.broadcast %326 : f32 to vector<8x128xf32>
    %328 = arith.mulf %0, %327 : vector<8x128xf32>
    %c27_83 = arith.constant 27 : index
    %329 = memref.load %arg3[%c27_83] : memref<32xf32, #tpu.memory_space<smem>>
    %330 = vector.broadcast %329 : f32 to vector<8x128xf32>
    %331 = arith.addf %328, %330 : vector<8x128xf32>
    %cst_84 = arith.constant 0.000000e+00 : f32
    %332 = vector.broadcast %cst_84 : f32 to vector<8x128xf32>
    %333 = arith.maximumf %331, %332 : vector<8x128xf32>
    %c27_85 = arith.constant 27 : index
    %334 = memref.load %arg4[%c27_85] : memref<32xf32, #tpu.memory_space<smem>>
    %335 = vector.broadcast %334 : f32 to vector<8x128xf32>
    %336 = arith.mulf %333, %335 : vector<8x128xf32>
    %337 = arith.addf %325, %336 : vector<8x128xf32>
    %c28 = arith.constant 28 : index
    %338 = memref.load %arg2[%c28] : memref<32xf32, #tpu.memory_space<smem>>
    %339 = vector.broadcast %338 : f32 to vector<8x128xf32>
    %340 = arith.mulf %0, %339 : vector<8x128xf32>
    %c28_86 = arith.constant 28 : index
    %341 = memref.load %arg3[%c28_86] : memref<32xf32, #tpu.memory_space<smem>>
    %342 = vector.broadcast %341 : f32 to vector<8x128xf32>
    %343 = arith.addf %340, %342 : vector<8x128xf32>
    %cst_87 = arith.constant 0.000000e+00 : f32
    %344 = vector.broadcast %cst_87 : f32 to vector<8x128xf32>
    %345 = arith.maximumf %343, %344 : vector<8x128xf32>
    %c28_88 = arith.constant 28 : index
    %346 = memref.load %arg4[%c28_88] : memref<32xf32, #tpu.memory_space<smem>>
    %347 = vector.broadcast %346 : f32 to vector<8x128xf32>
    %348 = arith.mulf %345, %347 : vector<8x128xf32>
    %349 = arith.addf %337, %348 : vector<8x128xf32>
    %c29 = arith.constant 29 : index
    %350 = memref.load %arg2[%c29] : memref<32xf32, #tpu.memory_space<smem>>
    %351 = vector.broadcast %350 : f32 to vector<8x128xf32>
    %352 = arith.mulf %0, %351 : vector<8x128xf32>
    %c29_89 = arith.constant 29 : index
    %353 = memref.load %arg3[%c29_89] : memref<32xf32, #tpu.memory_space<smem>>
    %354 = vector.broadcast %353 : f32 to vector<8x128xf32>
    %355 = arith.addf %352, %354 : vector<8x128xf32>
    %cst_90 = arith.constant 0.000000e+00 : f32
    %356 = vector.broadcast %cst_90 : f32 to vector<8x128xf32>
    %357 = arith.maximumf %355, %356 : vector<8x128xf32>
    %c29_91 = arith.constant 29 : index
    %358 = memref.load %arg4[%c29_91] : memref<32xf32, #tpu.memory_space<smem>>
    %359 = vector.broadcast %358 : f32 to vector<8x128xf32>
    %360 = arith.mulf %357, %359 : vector<8x128xf32>
    %361 = arith.addf %349, %360 : vector<8x128xf32>
    %c30 = arith.constant 30 : index
    %362 = memref.load %arg2[%c30] : memref<32xf32, #tpu.memory_space<smem>>
    %363 = vector.broadcast %362 : f32 to vector<8x128xf32>
    %364 = arith.mulf %0, %363 : vector<8x128xf32>
    %c30_92 = arith.constant 30 : index
    %365 = memref.load %arg3[%c30_92] : memref<32xf32, #tpu.memory_space<smem>>
    %366 = vector.broadcast %365 : f32 to vector<8x128xf32>
    %367 = arith.addf %364, %366 : vector<8x128xf32>
    %cst_93 = arith.constant 0.000000e+00 : f32
    %368 = vector.broadcast %cst_93 : f32 to vector<8x128xf32>
    %369 = arith.maximumf %367, %368 : vector<8x128xf32>
    %c30_94 = arith.constant 30 : index
    %370 = memref.load %arg4[%c30_94] : memref<32xf32, #tpu.memory_space<smem>>
    %371 = vector.broadcast %370 : f32 to vector<8x128xf32>
    %372 = arith.mulf %369, %371 : vector<8x128xf32>
    %373 = arith.addf %361, %372 : vector<8x128xf32>
    %c31 = arith.constant 31 : index
    %374 = memref.load %arg2[%c31] : memref<32xf32, #tpu.memory_space<smem>>
    %375 = vector.broadcast %374 : f32 to vector<8x128xf32>
    %376 = arith.mulf %0, %375 : vector<8x128xf32>
    %c31_95 = arith.constant 31 : index
    %377 = memref.load %arg3[%c31_95] : memref<32xf32, #tpu.memory_space<smem>>
    %378 = vector.broadcast %377 : f32 to vector<8x128xf32>
    %379 = arith.addf %376, %378 : vector<8x128xf32>
    %cst_96 = arith.constant 0.000000e+00 : f32
    %380 = vector.broadcast %cst_96 : f32 to vector<8x128xf32>
    %381 = arith.maximumf %379, %380 : vector<8x128xf32>
    %c31_97 = arith.constant 31 : index
    %382 = memref.load %arg4[%c31_97] : memref<32xf32, #tpu.memory_space<smem>>
    %383 = vector.broadcast %382 : f32 to vector<8x128xf32>
    %384 = arith.mulf %381, %383 : vector<8x128xf32>
    %385 = arith.addf %373, %384 : vector<8x128xf32>
    %c0_98 = arith.constant 0 : index
    %386 = memref.load %arg5[%c0_98] : memref<1xf32, #tpu.memory_space<smem>>
    %387 = vector.broadcast %386 : f32 to vector<8x128xf32>
    %388 = arith.addf %385, %387 : vector<8x128xf32>
    %c0_99 = arith.constant 0 : index
    %c0_100 = arith.constant 0 : index
    %389 = vector.load %arg6[%c0_99, %c0_100] : memref<8x128xf32, #tpu.memory_space<vmem>>, vector<8x128xf32>
    tpu.vector_store %arg6[%c0_99, %c0_100], %388 {strides = array<i32>} : memref<8x128xf32, #tpu.memory_space<vmem>>, vector<8x128xf32>,
    return
  }
  func.func @transform_0(%arg0: i32) -> (i32, i32) {
    %c0_i32 = arith.constant 0 : i32
    %c0_i32_0 = arith.constant 0 : i32
    return %arg0, %c0_i32 : i32, i32
  }
  func.func @transform_1(%arg0: i32) -> i32 {
    %c0_i32 = arith.constant 0 : i32
    %c0_i32_0 = arith.constant 0 : i32
    return %c0_i32 : i32
  }
  func.func @transform_2(%arg0: i32) -> i32 {
    %c0_i32 = arith.constant 0 : i32
    %c0_i32_0 = arith.constant 0 : i32
    return %c0_i32 : i32
  }
  func.func @transform_3(%arg0: i32) -> i32 {
    %c0_i32 = arith.constant 0 : i32
    %c0_i32_0 = arith.constant 0 : i32
    return %c0_i32 : i32
  }
  func.func @transform_4(%arg0: i32) -> i32 {
    %c0_i32 = arith.constant 0 : i32
    %c0_i32_0 = arith.constant 0 : i32
    return %c0_i32 : i32
  }
  func.func @transform_5(%arg0: i32) -> (i32, i32) {
    %c0_i32 = arith.constant 0 : i32
    %c0_i32_0 = arith.constant 0 : i32
    return %arg0, %c0_i32 : i32, i32
  }
}

</mosaic_0001>

<bundles_post_ra>
// kernel: tpu_custom_call.1
= control target key start
LH: loop header
LB: loop body
LE: loop exit
PB: predicated region body
PF: predicated region fallthrough
CT: control target
= control target key end

     0   :  { %11 = vsyncpa [#allocation4], 0  ;;  %s1005_s0 = inlined_call_operand.hbm [shape: f32[8,128], index: 0, kind: input, shape index: {}]   ;;  %s1006_s1 = inlined_call_operand.vmem [shape: f32[32], index: 1, kind: input, shape index: {}]   ;;  %s1007_s2 = inlined_call_operand.vmem [shape: f32[32], index: 2, kind: input, shape index: {}]   ;;  %s1008_s3 = inlined_call_operand.vmem [shape: f32[32], index: 3, kind: input, shape index: {}]   ;;  %s1009_s4 = inlined_call_operand.<no memory space> [shape: f32[1], index: 4, kind: input, shape index: {}]   ;;  %s1010_s5 = inlined_call_operand.hbm [shape: f32[8,128], index: 5, kind: output, shape index: {}]  }
   0x1   :  { %12 = vsyncpa [#allocation6], 0 }
   0x2   :  { %13 = vsyncpa [#allocation9], 0  ;;  %s41_s20 = sshll.u32 %s1007_s2, 4  ;;  %s42_s20 = int_to_ptr.vmem [resolvable:$true] %s41_s20 }
   0x3   :  { %14 = vsyncpa [#allocation5], 0  ;;  %s542_s21 = scalar_lea.vmem %s42_s20, 16  ;;  %p547_p1 = scmp.lt.s32.totalorder %s42_s20, %s42_s20 }
   0x4   :  { %p543_p0 = scmp.ne.s32.totalorder %s42_s20, %s542_s21  ;;  %p548_p2 = scmp.lt.s32.totalorder %s542_s21, %s542_s21 }
   0x6   :  { %p549_p3 = por %p548_p2, %p547_p1 }
   0x8   :  { %p550_p4 = pnand %p549_p3, %p543_p0 }
   0xa   :  { %553 = shalt.err (!%p550_p4)
}
   0xb   :  { %s630_s22 = smov [#allocation8]   ;;  %s631_s23 = smov [#allocation3]  }
   0xc   :  { %44 = dma.vmem_to_smem %s42_s20, 16, %s630_s22, [#allocation9]  }
   0xd   :  { %s21_s24 = sshll.u32 %s631_s23, 4  ;;  %s31_s27 = sshll.u32 %s1006_s1, 4  ;;  %s22_s24 = int_to_ptr.vmem [resolvable:$true] %s21_s24  ;;  %s32_s27 = int_to_ptr.vmem [resolvable:$true] %s31_s27 }
   0xe   :  { %s554_s29 = scalar_lea.hbm %s1005_s0, 128 }
   0xf   :  { %p555_p5 = scmp.ne.s32.totalorder %s1005_s0, %s554_s29  ;;  %p558_p6 = scmp.lt.u32.totalorder %s554_s29, %s1005_s0 }
  0x11   :  { %p560_p7 = pnand %p558_p6, %p555_p5 }
  0x13   :  { %563 = shalt.err (!%p560_p7)
}
  0x14   :  { %s564_s9 = scalar_lea.vmem %s22_s24, 128  ;;  %p569_p9 = scmp.lt.s32.totalorder %s22_s24, %s22_s24 }
  0x15   :  { %p565_p8 = scmp.ne.s32.totalorder %s22_s24, %s564_s9  ;;  %p570_p10 = scmp.lt.s32.totalorder %s564_s9, %s564_s9 }
  0x17   :  { %p571_p11 = por %p570_p10, %p569_p9 }
  0x19   :  { %p572_p12 = pnand %p571_p11, %p565_p8 }
  0x1b   :  { %575 = shalt.err (!%p572_p12)
}
  0x1c   :  { %24 = dma.hbm_to_vmem [thread:$0]  %s1005_s0, 128, %s22_s24, [#allocation4]  }
  0x1d   :  { %s51_s13 = sshll.u32 %s1008_s3, 4  ;;  %s576_s14 = scalar_lea.vmem %s32_s27, 16  ;;  %s52_s13 = int_to_ptr.vmem [resolvable:$true] %s51_s13 }
  0x1e   :  { %p577_p13 = scmp.ne.s32.totalorder %s32_s27, %s576_s14  ;;  %p581_p0 = scmp.lt.s32.totalorder %s32_s27, %s32_s27 }
  0x1f   :  { %p582_p1 = scmp.lt.s32.totalorder %s576_s14, %s576_s14 }
  0x21   :  { %p583_p2 = por %p582_p1, %p581_p0 }
  0x23   :  { %p584_p3 = pnand %p583_p2, %p577_p13 }
  0x25   :  { %587 = shalt.err (!%p584_p3)
}
  0x26   :  { %s632_s15 = smov [#allocation7]   ;;  %s588_s16 = scalar_lea.vmem %s52_s13, 16 }
  0x27   :  { %34 = dma.vmem_to_smem %s32_s27, 16, %s632_s15, [#allocation6]  }
  0x28   :  { %p589_p4 = scmp.ne.s32.totalorder %s52_s13, %s588_s16  ;;  %p593_p5 = scmp.lt.s32.totalorder %s52_s13, %s52_s13 }
  0x29   :  { %p594_p6 = scmp.lt.s32.totalorder %s588_s16, %s588_s16 }
  0x2b   :  { %p595_p7 = por %p594_p6, %p593_p5 }
  0x2d   :  { %p596_p8 = pnand %p595_p7, %p589_p4 }
  0x2f   :  { %599 = shalt.err (!%p596_p8)
}
  0x30   :  { %s633_s0 = smov [#allocation10]  }
  0x31   :  { %54 = dma.vmem_to_smem %s52_s13, 16, %s633_s0, [#allocation9]  }
  0x32   :  { %622 = dma.done.wait [#allocation4], 128  }
  0x33   :  { %623 = vsyncadd [#allocation4], 4294967168 }
  0x34   :  { %624 = dma.done.wait [#allocation6], 16  }
  0x35   :  { %625 = vsyncadd [#allocation6], 4294967280 }
  0x36   :  { %626 = dma.done.wait [#allocation9], 32  }
  0x37   :  { %627 = vsyncadd [#allocation9], 4294967264 }
  0x38   :  { %69 = sfence }
  0x39   :  { %s71_s3 = sld [smem:[#allocation7]]  ;;  %s444_s19 = sld [smem:[#allocation7 + $0x1]]  ;;  %v692_v0 = vld [vmem:[#allocation3] sm:$0xff] }
  0x3a   :  { %s74_s17 = sld [smem:[#allocation8]]  ;;  %s445_s20 = sld [smem:[#allocation8 + $0x1]] }
  0x3b   :  { %s686_s18 = sld [smem:[#allocation10]]  ;;  %s688_s21 = sld [smem:[#allocation10 + $0x1]] }
  0x3c   :  { %s447_s22 = sld [smem:[#allocation7 + $0x2]]  ;;  %s450_s25 = sld [smem:[#allocation7 + $0x3]] }
  0x3d   :  { %s690_s23 = sld [smem:[#allocation8 + $0x2]]  ;;  %s696_s26 = sld [smem:[#allocation8 + $0x3]] }
  0x3e   :  { %s694_s24 = sld [smem:[#allocation10 + $0x2]]  ;;  %s698_s27 = sld [smem:[#allocation10 + $0x3]] }
  0x3f   :  { %v72_v1 = vstv %s71_s3  ;;  %s700_s2 = sld [smem:[#allocation7 + $0x4]]  ;;  %v83_v4 = vstv %s444_s19  ;;  %s707_s30 = sld [smem:[#allocation7 + $0x5]] }
  0x40   :  { %v75_v2 = vstv %s74_s17  ;;  %s702_s28 = sld [smem:[#allocation8 + $0x4]]  ;;  %v73_v3 = vmul.f32 %v72_v1, %v692_v0  ;;  %v84_v5 = vmul.f32 %v83_v4, %v692_v0  ;;  %v86_v6 = vstv %s445_s20  ;;  %s710_s6 = sld [smem:[#allocation8 + $0x5]] }
  0x41   :  { %s705_s29 = sld [smem:[#allocation10 + $0x4]]  ;;  %v79_v8 = vstv %s686_s18  ;;  %s714_s7 = sld [smem:[#allocation7 + $0x6]]  ;;  %v90_v12 = vstv %s688_s21 }
  0x42   :  { %v76_v7 = vadd.f32 %v75_v2, %v73_v3  ;;  %v94_v9 = vstv %s447_s22  ;;  %s716_s8 = sld [smem:[#allocation8 + $0x6]]  ;;  %v87_v11 = vadd.f32 %v86_v6, %v84_v5  ;;  %v105_v14 = vstv %s450_s25  ;;  %s720_s9 = sld [smem:[#allocation10 + $0x5]] }
  0x43   :  { %v97_v10 = vstv %s690_s23  ;;  %v95_v13 = vmul.f32 %v94_v9, %v692_v0  ;;  %s722_s1 = sld [smem:[#allocation7 + $0x7]]  ;;  %v106_v17 = vmul.f32 %v105_v14, %v692_v0  ;;  %v108_v18 = vstv %s696_s26  ;;  %s727_s10 = sld [smem:[#allocation10 + $0x6]] }
  0x44   :  { %v77_v15 = vmax.f32 %v76_v7, 0.0  ;;  %v101_v16 = vstv %s694_s24  ;;  %s729_s11 = sld [smem:[#allocation8 + $0x7]]  ;;  %v88_v19 = vmax.f32 %v87_v11, 0.0  ;;  %s733_s12 = sld [smem:[#allocation7 + $0x8]]  ;;  %v112_v25 = vstv %s698_s27 }
  0x45   :  { %v98_v20 = vadd.f32 %v97_v10, %v95_v13  ;;  %v116_v21 = vstv %s700_s2  ;;  %s735_s13 = sld [smem:[#allocation8 + $0x8]]  ;;  %v109_v24 = vadd.f32 %v108_v18, %v106_v17  ;;  %s739_s14 = sld [smem:[#allocation10 + $0x7]]  ;;  %v127_v29 = vstv %s707_s30 }
  0x46   :  { %v119_v22 = vstv %s702_s28  ;;  %v80_v23 = vmul.f32 %v79_v8, %v77_v15  ;;  %v117_v26 = vmul.f32 %v116_v21, %v692_v0  ;;  %v91_v27 = vmul.f32 %v90_v12, %v88_v19  ;;  %s743_s15 = sld [smem:[#allocation7 + $0x9]]  ;;  %s749_s0 = sld [smem:[#allocation10 + $0x8]] }
  0x47   :  { %v99_v28 = vmax.f32 %v98_v20, 0.0  ;;  %v130_v30 = vstv %s710_s6  ;;  %s745_s16 = sld [smem:[#allocation8 + $0x9]]  ;;  %v110_v31 = vmax.f32 %v109_v24, 0.0  ;;  %v123_v33 = vstv %s705_s29  ;;  %s753_s3 = sld [smem:[#allocation7 + $0xa]] }
  0x48   :  { %v120_v32 = vadd.f32 %v119_v22, %v117_v26  ;;  %v128_v34 = vmul.f32 %v127_v29, %v692_v0  ;;  %v92_v35 = vadd.f32 %v91_v27, %v80_v23  ;;  %v138_v37 = vstv %s714_s7  ;;  %s755_s17 = sld [smem:[#allocation8 + $0xa]]  ;;  %s758_s18 = sld [smem:[#allocation10 + $0x9]] }
  0x49   :  { %v102_v36 = vmul.f32 %v101_v16, %v99_v28  ;;  %v141_v38 = vstv %s716_s8  ;;  %v113_v39 = vmul.f32 %v112_v25, %v110_v31  ;;  %v139_v42 = vmul.f32 %v138_v37, %v692_v0  ;;  %s763_s19 = sld [smem:[#allocation7 + $0xb]]  ;;  %s768_s21 = sld [smem:[#allocation10 + $0xa]] }
  0x4a   :  { %v121_v40 = vmax.f32 %v120_v32, 0.0  ;;  %v131_v41 = vadd.f32 %v130_v30, %v128_v34  ;;  %v134_v44 = vstv %s720_s9  ;;  %v149_v45 = vstv %s722_s1  ;;  %s765_s20 = sld [smem:[#allocation8 + $0xb]]  ;;  %s773_s22 = sld [smem:[#allocation7 + $0xc]] }
  0x4b   :  { %v103_v43 = vadd.f32 %v102_v36, %v92_v35  ;;  %v152_v46 = vstv %s729_s11  ;;  %v142_v49 = vadd.f32 %v141_v38, %v139_v42  ;;  %v150_v50 = vmul.f32 %v149_v45, %v692_v0  ;;  %s775_s23 = sld [smem:[#allocation8 + $0xc]]  ;;  %s778_s24 = sld [smem:[#allocation10 + $0xb]] }
  0x4c   :  { %v124_v47 = vmul.f32 %v123_v33, %v121_v40  ;;  %v132_v48 = vmax.f32 %v131_v41, 0.0  ;;  %v145_v52 = vstv %s727_s10  ;;  %v160_v53 = vstv %s733_s12  ;;  %s783_s25 = sld [smem:[#allocation7 + $0xd]]  ;;  %s788_s27 = sld [smem:[#allocation10 + $0xc]] }
  0x4d   :  { %v114_v51 = vadd.f32 %v113_v39, %v103_v43  ;;  %v163_v54 = vstv %s735_s13  ;;  %v143_v56 = vmax.f32 %v142_v49, 0.0  ;;  %v153_v57 = vadd.f32 %v152_v46, %v150_v50  ;;  %s785_s26 = sld [smem:[#allocation8 + $0xd]]  ;;  %s793_s2 = sld [smem:[#allocation7 + $0xe]] }
  0x4e   :  { %v135_v55 = vmul.f32 %v134_v44, %v132_v48  ;;  %v161_v58 = vmul.f32 %v160_v53, %v692_v0  ;;  %v156_v60 = vstv %s739_s14  ;;  %v171_v61 = vstv %s743_s15  ;;  %s795_s28 = sld [smem:[#allocation8 + $0xe]]  ;;  %s798_s29 = sld [smem:[#allocation10 + $0xd]] }
  0x4f   :  { %v125_v59 = vadd.f32 %v124_v47, %v114_v51  ;;  %v174_v62 = vstv %s745_s16  ;;  %v146_v63 = vmul.f32 %v145_v52, %v143_v56  ;;  %v154_v1 = vmax.f32 %v153_v57, 0.0  ;;  %s803_s30 = sld [smem:[#allocation7 + $0xf]]  ;;  %s808_s7 = sld [smem:[#allocation10 + $0xe]] }
  0x50   :  { %v164_v2 = vadd.f32 %v163_v54, %v161_v58  ;;  %v172_v3 = vmul.f32 %v171_v61, %v692_v0  ;;  %v167_v5 = vstv %s749_s0  ;;  %v182_v6 = vstv %s753_s3  ;;  %s805_s6 = sld [smem:[#allocation8 + $0xf]]  ;;  %s813_s8 = sld [smem:[#allocation7 + $0x10]] }
  0x51   :  { %v136_v4 = vadd.f32 %v135_v55, %v125_v59  ;;  %v185_v7 = vstv %s755_s17  ;;  %v157_v8 = vmul.f32 %v156_v60, %v154_v1  ;;  %v183_v11 = vmul.f32 %v182_v6, %v692_v0  ;;  %s815_s9 = sld [smem:[#allocation8 + $0x10]]  ;;  %s818_s1 = sld [smem:[#allocation10 + $0xf]] }
  0x52   :  { %v165_v9 = vmax.f32 %v164_v2, 0.0  ;;  %v175_v10 = vadd.f32 %v174_v62, %v172_v3  ;;  %v178_v13 = vstv %s758_s18  ;;  %v193_v14 = vstv %s763_s19  ;;  %s823_s10 = sld [smem:[#allocation7 + $0x11]]  ;;  %s828_s12 = sld [smem:[#allocation10 + $0x10]] }
  0x53   :  { %v147_v12 = vadd.f32 %v146_v63, %v136_v4  ;;  %v196_v15 = vstv %s765_s20  ;;  %v186_v18 = vadd.f32 %v185_v7, %v183_v11  ;;  %v194_v19 = vmul.f32 %v193_v14, %v692_v0  ;;  %s825_s11 = sld [smem:[#allocation8 + $0x11]]  ;;  %s833_s13 = sld [smem:[#allocation7 + $0x12]] }
  0x54   :  { %v168_v16 = vmul.f32 %v167_v5, %v165_v9  ;;  %v176_v17 = vmax.f32 %v175_v10, 0.0  ;;  %v189_v21 = vstv %s768_s21  ;;  %v204_v22 = vstv %s773_s22  ;;  %s835_s14 = sld [smem:[#allocation8 + $0x12]]  ;;  %s838_s15 = sld [smem:[#allocation10 + $0x11]] }
  0x55   :  { %v158_v20 = vadd.f32 %v157_v8, %v147_v12  ;;  %v207_v23 = vstv %s775_s23  ;;  %v187_v25 = vmax.f32 %v186_v18, 0.0  ;;  %v197_v26 = vadd.f32 %v196_v15, %v194_v19  ;;  %s843_s16 = sld [smem:[#allocation7 + $0x13]]  ;;  %s848_s3 = sld [smem:[#allocation10 + $0x12]] }
  0x56   :  { %v179_v24 = vmul.f32 %v178_v13, %v176_v17  ;;  %v205_v27 = vmul.f32 %v204_v22, %v692_v0  ;;  %v200_v29 = vstv %s778_s24  ;;  %v215_v30 = vstv %s783_s25  ;;  %s845_s0 = sld [smem:[#allocation8 + $0x13]]  ;;  %s853_s17 = sld [smem:[#allocation7 + $0x14]] }
  0x57   :  { %v169_v28 = vadd.f32 %v168_v16, %v158_v20  ;;  %v218_v31 = vstv %s785_s26  ;;  %v190_v32 = vmul.f32 %v189_v21, %v187_v25  ;;  %v198_v33 = vmax.f32 %v197_v26, 0.0  ;;  %s855_s18 = sld [smem:[#allocation8 + $0x14]]  ;;  %s858_s19 = sld [smem:[#allocation10 + $0x13]] }
  0x58   :  { %v208_v34 = vadd.f32 %v207_v23, %v205_v27  ;;  %v216_v35 = vmul.f32 %v215_v30, %v692_v0  ;;  %v211_v37 = vstv %s788_s27  ;;  %v226_v38 = vstv %s793_s2  ;;  %s863_s20 = sld [smem:[#allocation7 + $0x15]]  ;;  %s868_s22 = sld [smem:[#allocation10 + $0x14]] }
  0x59   :  { %v180_v36 = vadd.f32 %v179_v24, %v169_v28  ;;  %v229_v39 = vstv %s795_s28  ;;  %v201_v40 = vmul.f32 %v200_v29, %v198_v33  ;;  %v227_v43 = vmul.f32 %v226_v38, %v692_v0  ;;  %s865_s21 = sld [smem:[#allocation8 + $0x15]]  ;;  %s873_s23 = sld [smem:[#allocation7 + $0x16]] }
  0x5a   :  { %v209_v41 = vmax.f32 %v208_v34, 0.0  ;;  %v219_v42 = vadd.f32 %v218_v31, %v216_v35  ;;  %v222_v45 = vstv %s798_s29  ;;  %v237_v46 = vstv %s803_s30  ;;  %s875_s24 = sld [smem:[#allocation8 + $0x16]]  ;;  %s878_s25 = sld [smem:[#allocation10 + $0x15]] }
  0x5b   :  { %v191_v44 = vadd.f32 %v190_v32, %v180_v36  ;;  %v240_v47 = vstv %s805_s6  ;;  %v230_v50 = vadd.f32 %v229_v39, %v227_v43  ;;  %v238_v51 = vmul.f32 %v237_v46, %v692_v0  ;;  %s883_s26 = sld [smem:[#allocation7 + $0x17]]  ;;  %s888_s2 = sld [smem:[#allocation10 + $0x16]] }
  0x5c   :  { %v212_v48 = vmul.f32 %v211_v37, %v209_v41  ;;  %v220_v49 = vmax.f32 %v219_v42, 0.0  ;;  %v233_v53 = vstv %s808_s7  ;;  %v248_v54 = vstv %s813_s8  ;;  %s885_s27 = sld [smem:[#allocation8 + $0x17]]  ;;  %s893_s28 = sld [smem:[#allocation7 + $0x18]] }
  0x5d   :  { %v202_v52 = vadd.f32 %v201_v40, %v191_v44  ;;  %v251_v55 = vstv %s815_s9  ;;  %v231_v57 = vmax.f32 %v230_v50, 0.0  ;;  %v241_v58 = vadd.f32 %v240_v47, %v238_v51  ;;  %s895_s29 = sld [smem:[#allocation8 + $0x18]]  ;;  %s898_s30 = sld [smem:[#allocation10 + $0x17]] }
  0x5e   :  { %v223_v56 = vmul.f32 %v222_v45, %v220_v49  ;;  %v249_v59 = vmul.f32 %v248_v54, %v692_v0  ;;  %v244_v61 = vstv %s818_s1  ;;  %v259_v62 = vstv %s823_s10  ;;  %s903_s6 = sld [smem:[#allocation7 + $0x19]]  ;;  %s908_s8 = sld [smem:[#allocation10 + $0x18]] }
  0x5f   :  { %v213_v60 = vadd.f32 %v212_v48, %v202_v52  ;;  %v262_v63 = vstv %s825_s11  ;;  %v234_v1 = vmul.f32 %v233_v53, %v231_v57  ;;  %v242_v2 = vmax.f32 %v241_v58, 0.0  ;;  %s905_s7 = sld [smem:[#allocation8 + $0x19]]  ;;  %s913_s9 = sld [smem:[#allocation7 + $0x1a]] }
  0x60   :  { %v252_v3 = vadd.f32 %v251_v55, %v249_v59  ;;  %v260_v4 = vmul.f32 %v259_v62, %v692_v0  ;;  %v255_v6 = vstv %s828_s12  ;;  %v270_v7 = vstv %s833_s13  ;;  %s915_s1 = sld [smem:[#allocation8 + $0x1a]]  ;;  %s918_s10 = sld [smem:[#allocation10 + $0x19]] }
  0x61   :  { %v224_v5 = vadd.f32 %v223_v56, %v213_v60  ;;  %v273_v8 = vstv %s835_s14  ;;  %v245_v9 = vmul.f32 %v244_v61, %v242_v2  ;;  %v271_v12 = vmul.f32 %v270_v7, %v692_v0  ;;  %s923_s11 = sld [smem:[#allocation7 + $0x1b]]  ;;  %s928_s13 = sld [smem:[#allocation10 + $0x1a]] }
  0x62   :  { %v253_v10 = vmax.f32 %v252_v3, 0.0  ;;  %v263_v11 = vadd.f32 %v262_v63, %v260_v4  ;;  %v266_v14 = vstv %s838_s15  ;;  %v281_v15 = vstv %s843_s16  ;;  %s925_s12 = sld [smem:[#allocation8 + $0x1b]]  ;;  %s933_s14 = sld [smem:[#allocation7 + $0x1c]] }
  0x63   :  { %v235_v13 = vadd.f32 %v234_v1, %v224_v5  ;;  %v284_v16 = vstv %s845_s0  ;;  %v274_v19 = vadd.f32 %v273_v8, %v271_v12  ;;  %v282_v20 = vmul.f32 %v281_v15, %v692_v0  ;;  %s935_s15 = sld [smem:[#allocation8 + $0x1c]]  ;;  %s938_s16 = sld [smem:[#allocation10 + $0x1b]] }
  0x64   :  { %v256_v17 = vmul.f32 %v255_v6, %v253_v10  ;;  %v264_v18 = vmax.f32 %v263_v11, 0.0  ;;  %v277_v22 = vstv %s848_s3  ;;  %v292_v23 = vstv %s853_s17  ;;  %s943_s0 = sld [smem:[#allocation7 + $0x1d]]  ;;  %s948_s17 = sld [smem:[#allocation10 + $0x1c]] }
  0x65   :  { %v246_v21 = vadd.f32 %v245_v9, %v235_v13  ;;  %v295_v24 = vstv %s855_s18  ;;  %v275_v26 = vmax.f32 %v274_v19, 0.0  ;;  %v285_v27 = vadd.f32 %v284_v16, %v282_v20  ;;  %s945_s3 = sld [smem:[#allocation8 + $0x1d]]  ;;  %s953_s18 = sld [smem:[#allocation7 + $0x1e]] }
  0x66   :  { %v267_v25 = vmul.f32 %v266_v14, %v264_v18  ;;  %v293_v28 = vmul.f32 %v292_v23, %v692_v0  ;;  %v288_v30 = vstv %s858_s19  ;;  %v303_v31 = vstv %s863_s20  ;;  %s955_s19 = sld [smem:[#allocation8 + $0x1e]]  ;;  %s958_s20 = sld [smem:[#allocation10 + $0x1d]] }
  0x67   :  { %v257_v29 = vadd.f32 %v256_v17, %v246_v21  ;;  %v306_v32 = vstv %s865_s21  ;;  %v278_v33 = vmul.f32 %v277_v22, %v275_v26  ;;  %v286_v34 = vmax.f32 %v285_v27, 0.0  ;;  %s963_s21 = sld [smem:[#allocation7 + $0x1f]] }
  0x68   :  { %v296_v35 = vadd.f32 %v295_v24, %v293_v28  ;;  %v304_v36 = vmul.f32 %v303_v31, %v692_v0  ;;  %v299_v38 = vstv %s868_s22  ;;  %v314_v39 = vstv %s873_s23  ;;  %s965_s22 = sld [smem:[#allocation8 + $0x1f]]  ;;  %s971_s23 = sld [smem:[#allocation10 + $0x1e]] }
  0x69   :  { %v268_v37 = vadd.f32 %v267_v25, %v257_v29  ;;  %v317_v40 = vstv %s875_s24  ;;  %v289_v41 = vmul.f32 %v288_v30, %v286_v34  ;;  %v315_v44 = vmul.f32 %v314_v39, %v692_v0  ;;  %s977_s24 = sld [smem:[#allocation10 + $0x1f]] }
  0x6a   :  { %v297_v42 = vmax.f32 %v296_v35, 0.0  ;;  %v307_v43 = vadd.f32 %v306_v32, %v304_v36  ;;  %v310_v46 = vstv %s878_s25  ;;  %v325_v47 = vstv %s883_s26 }
  0x6b   :  { %v279_v45 = vadd.f32 %v278_v33, %v268_v37  ;;  %v328_v48 = vstv %s885_s27  ;;  %v318_v51 = vadd.f32 %v317_v40, %v315_v44  ;;  %v326_v52 = vmul.f32 %v325_v47, %v692_v0  ;;  %s634_s27 = smov [#allocation11]  }
  0x6c   :  { %v300_v49 = vmul.f32 %v299_v38, %v297_v42  ;;  %v308_v50 = vmax.f32 %v307_v43, 0.0  ;;  %v321_v54 = vstv %s888_s2  ;;  %v336_v55 = vstv %s893_s28  ;;  %s433_s2 = sshll.u32 %s634_s27, 4  ;;  %s434_s2 = int_to_ptr.vmem [resolvable:$true] %s433_s2 }
  0x6d   :  { %v290_v53 = vadd.f32 %v289_v41, %v279_v45  ;;  %v339_v56 = vstv %s895_s29  ;;  %v319_v58 = vmax.f32 %v318_v51, 0.0  ;;  %v329_v59 = vadd.f32 %v328_v48, %v326_v52  ;;  %s600_s28 = scalar_lea.vmem %s434_s2, 128  ;;  %p605_p10 = scmp.lt.s32.totalorder %s434_s2, %s434_s2 }
  0x6e   :  { %v311_v57 = vmul.f32 %v310_v46, %v308_v50  ;;  %v337_v60 = vmul.f32 %v336_v55, %v692_v0  ;;  %v332_v62 = vstv %s898_s30  ;;  %v347_v63 = vstv %s903_s6  ;;  %p601_p9 = scmp.ne.s32.totalorder %s434_s2, %s600_s28  ;;  %p606_p11 = scmp.lt.s32.totalorder %s600_s28, %s600_s28 }
  0x6f   :  { %v301_v61 = vadd.f32 %v300_v49, %v290_v53  ;;  %v350_v1 = vstv %s905_s7  ;;  %v322_v2 = vmul.f32 %v321_v54, %v319_v58  ;;  %v330_v3 = vmax.f32 %v329_v59, 0.0 }
  0x70   :  { %v340_v4 = vadd.f32 %v339_v56, %v337_v60  ;;  %v348_v5 = vmul.f32 %v347_v63, %v692_v0  ;;  %v343_v7 = vstv %s908_s8  ;;  %v358_v8 = vstv %s913_s9  ;;  %p607_p12 = por %p606_p11, %p605_p10 }
  0x71   :  { %v312_v6 = vadd.f32 %v311_v57, %v301_v61  ;;  %v361_v9 = vstv %s915_s1  ;;  %v333_v10 = vmul.f32 %v332_v62, %v330_v3  ;;  %v359_v13 = vmul.f32 %v358_v8, %v692_v0 }
  0x72   :  { %v341_v11 = vmax.f32 %v340_v4, 0.0  ;;  %v351_v12 = vadd.f32 %v350_v1, %v348_v5  ;;  %v354_v15 = vstv %s918_s10  ;;  %v369_v16 = vstv %s923_s11  ;;  %p608_p13 = pnand %p607_p12, %p601_p9 }
  0x73   :  { %v323_v14 = vadd.f32 %v322_v2, %v312_v6  ;;  %v372_v17 = vstv %s925_s12  ;;  %v362_v20 = vadd.f32 %v361_v9, %v359_v13  ;;  %v370_v21 = vmul.f32 %v369_v16, %v692_v0 }
  0x74   :  { %v344_v18 = vmul.f32 %v343_v7, %v341_v11  ;;  %v352_v19 = vmax.f32 %v351_v12, 0.0  ;;  %v365_v23 = vstv %s928_s13  ;;  %v380_v24 = vstv %s933_s14 }
  0x75   :  { %v334_v22 = vadd.f32 %v333_v10, %v323_v14  ;;  %v383_v25 = vstv %s935_s15  ;;  %v363_v27 = vmax.f32 %v362_v20, 0.0  ;;  %v373_v28 = vadd.f32 %v372_v17, %v370_v21 }
  0x76   :  { %v355_v26 = vmul.f32 %v354_v15, %v352_v19  ;;  %v381_v29 = vmul.f32 %v380_v24, %v692_v0  ;;  %v376_v31 = vstv %s938_s16  ;;  %v391_v32 = vstv %s943_s0 }
  0x77   :  { %v345_v30 = vadd.f32 %v344_v18, %v334_v22  ;;  %v394_v33 = vstv %s945_s3  ;;  %v366_v34 = vmul.f32 %v365_v23, %v363_v27  ;;  %v374_v35 = vmax.f32 %v373_v28, 0.0 }
  0x78   :  { %v384_v36 = vadd.f32 %v383_v25, %v381_v29  ;;  %v392_v37 = vmul.f32 %v391_v32, %v692_v0  ;;  %v387_v39 = vstv %s948_s17  ;;  %v402_v40 = vstv %s953_s18 }
  0x79   :  { %v356_v38 = vadd.f32 %v355_v26, %v345_v30  ;;  %v405_v41 = vstv %s955_s19  ;;  %v377_v42 = vmul.f32 %v376_v31, %v374_v35  ;;  %v403_v45 = vmul.f32 %v402_v40, %v692_v0 }
  0x7a   :  { %v385_v43 = vmax.f32 %v384_v36, 0.0  ;;  %v395_v44 = vadd.f32 %v394_v33, %v392_v37  ;;  %v398_v47 = vstv %s958_s20  ;;  %v413_v48 = vstv %s963_s21 }
  0x7b   :  { %v367_v46 = vadd.f32 %v366_v34, %v356_v38  ;;  %v416_v49 = vstv %s965_s22  ;;  %v406_v52 = vadd.f32 %v405_v41, %v403_v45  ;;  %v414_v53 = vmul.f32 %v413_v48, %v692_v0 }
  0x7c   :  { %v388_v50 = vmul.f32 %v387_v39, %v385_v43  ;;  %v396_v51 = vmax.f32 %v395_v44, 0.0  ;;  %v409_v55 = vstv %s971_s23  ;;  %v420_v60 = vstv %s977_s24 }
  0x7d   :  { %v378_v54 = vadd.f32 %v377_v42, %v367_v46  ;;  %v407_v57 = vmax.f32 %v406_v52, 0.0  ;;  %v417_v58 = vadd.f32 %v416_v49, %v414_v53  ;;  %v424_v3 = vstv %s1009_s4 }
  0x7e   :  { %v399_v56 = vmul.f32 %v398_v47, %v396_v51 }
  0x7f   :  { %v389_v59 = vadd.f32 %v388_v50, %v378_v54  ;;  %v410_v61 = vmul.f32 %v409_v55, %v407_v57  ;;  %v418_v62 = vmax.f32 %v417_v58, 0.0 }
  0x81   :  { %v400_v63 = vadd.f32 %v399_v56, %v389_v59  ;;  %v421_v1 = vmul.f32 %v420_v60, %v418_v62 }
  0x83   :  { %v411_v2 = vadd.f32 %v410_v61, %v400_v63 }
  0x85   :  { %v422_v4 = vadd.f32 %v421_v1, %v411_v2 }
  0x87   :  { %v425_v0 = vadd.f32 %v424_v3, %v422_v4 }
  0x89   :  { %426 = vst [vmem:[#allocation11] sm:$0xff] %v425_v0 }
  0x8a   :  { %611 = shalt.err (!%p608_p13)
}
  0x8b   :  { %s612_s6 = scalar_lea.hbm %s1010_s5, 128 }
  0x8c   :  { %p613_p0 = scmp.ne.s32.totalorder %s1010_s5, %s612_s6  ;;  %p616_p1 = scmp.lt.u32.totalorder %s612_s6, %s1010_s5 }
  0x8e   :  { %p618_p2 = pnand %p616_p1, %p613_p0 }
  0x90   :  { %621 = shalt.err (!%p618_p2)
}
  0x91   :  { %436 = dma.vmem_to_hbm [thread:$0]  %s434_s2, 128, %s1010_s5, [#allocation5]  }
  0x92   :  { %628 = dma.done.wait [#allocation5], 128  }
  0x93   :  { %629 = vsyncadd [#allocation5], 4294967168 }
  0x94   :  { %440 = vsyncpa [#allocation4], 1 }
  0x95   :  { %441 = vsyncpa [#allocation5], 1 }
  0x96   :  { %442 = vsyncpa [#allocation6], 1 }
  0x97   :  { %443 = vsyncpa [#allocation9], 1 }

</bundles_post_ra>
